<compile_context>
chip_gen: v6e
topology: v6e:2x2x1
jax: 0.10.0
libtpu: 0.0.40
codegen_flags: <defaults>
</compile_context>

<pallas_src>
import jax
import jax.numpy as jnp
from jax.experimental import pallas as pl
from jax.experimental.pallas import tpu as pltpu

LANES = 128                 # lane tile (last dim)
DEFAULT_BLOCK_ROWS = 8192   # 4 MiB f32 per input block (sweepable: 4096 / 8192)
ACC_ROWS_MAX = 64           # accumulator scratch rows (<= 8 f32 vregs)
NUM_CORES = 2               # v7x megacore split (harmless on 1-TC chips)


def _round_up(x: int, m: int) -> int:
    return ((x + m - 1) // m) * m


def _make_mse_kernel(rows: int, block_rows: int, acc_rows: int,
                     blocks_per_slice: int, first_masked_block: int,
                     padded_blocks: int):
    """Sum-of-squared-diff kernel with a vreg-sized accumulator.

    Steady-state blocks take a mask-free path; only the last (ragged) data block and
    any grid-padding blocks pay the iota+compare+select cost.
    """
    groups = block_rows // acc_rows
    needs_mask = first_masked_block < padded_blocks  # static

    def accum(acc_ref, d):
        # Leading-axis fold: layout-preserving reshape + vreg-wise VALU adds (no XLU),
        # ~8 independent accumulation chains (one per acc vreg).
        acc_ref[...] += (d * d).reshape(groups, acc_rows, LANES).sum(axis=0)

    def mse_kernel(p_ref, t_ref, o_ref, acc_ref):
        c = pl.program_id(0)   # core slice (parallel)
        i = pl.program_id(1)   # block within slice (arbitrary / reduction)

        @pl.when(i == 0)
        def _():
            acc_ref[...] = jnp.zeros_like(acc_ref)

        gidx = c * blocks_per_slice + i  # logical global block index

        def diff():
            return p_ref[...].astype(jnp.float32) - t_ref[...].astype(jnp.float32)

        if needs_mask:
            if first_masked_block > 0:
                @pl.when(gidx < first_masked_block)   # steady state: no mask ops
                def _():
                    accum(acc_ref, diff())

            @pl.when(gidx >= first_masked_block)      # ragged last block / padded blocks
            def _():
                d = diff()
                rid = jax.lax.broadcasted_iota(jnp.int32, d.shape, 0) + gidx * block_rows
                # Keep this a select (not a 0/1 multiply): out-of-range rows may hold
                # garbage/stale data and must not propagate NaN/Inf.
                accum(acc_ref, jnp.where(rid < rows, d, jnp.float32(0.0)))
        else:
            accum(acc_ref, diff())

        @pl.when(i == pl.num_programs(1) - 1)
        def _():
            # Fold (acc_rows, 128) -> (8, 128): vreg-wise adds only.
            o_ref[...] = acc_ref[...].reshape(acc_rows // 8, 8, LANES).sum(axis=0)

    return mse_kernel


@jax.jit
def tsbert_loss(preds: jax.Array, target: jax.Array) -> jax.Array:
    """Pallas equivalent of TSBERT_Loss()(preds, target) with default crit=MSELossFlat()."""
    assert preds.shape == target.shape, "preds/target must match in shape"
    n_elems = preds.size
    assert n_elems > 0, "TSBERT_Loss on empty tensors is undefined (mean of 0 elements)"
    itemsize = jnp.dtype(preds.dtype).itemsize

    p = preds.reshape(-1)   # free reshape (contiguous)
    t = target.reshape(-1)

    # Lane tail: only triggers when numel % 128 != 0. Handled with a tiny jnp.sum.
    aligned = (n_elems // LANES) * LANES
    tail_sum = jnp.float32(0.0)
    if aligned != n_elems:
        dt = p[aligned:].astype(jnp.float32) - t[aligned:].astype(jnp.float32)
        tail_sum = jnp.sum(dt * dt)
        # TODO(synk): this prefix slice materializes a copy of the aligned region when
        # numel % 128 != 0; a pl.ANY + manual-DMA path would avoid it. Aligned sizes
        # (the common case) take the zero-copy path.
        p = p[:aligned]
        t = t[:aligned]

    if aligned == 0:
        # Fewer than 128 elements total: nothing for the kernel to do.
        return tail_sum / jnp.float32(n_elems)

    rows = aligned // LANES
    p2 = p.reshape(rows, LANES)
    t2 = t.reshape(rows, LANES)

    # Dtype-aware sublane multiple: f32 -> 8, bf16 -> 16, int8/fp8 -> 32.
    sub_mult = max(8, 32 // itemsize)
    block_rows = DEFAULT_BLOCK_ROWS if rows >= DEFAULT_BLOCK_ROWS else _round_up(rows, sub_mult)
    acc_rows = min(ACC_ROWS_MAX, block_rows)
    if block_rows % acc_rows != 0:
        acc_rows = sub_mult  # tiny-input fallback; always divides block_rows

    total_blocks = pl.cdiv(rows, block_rows)
    # Always split across both TensorCores when there is more than one block — never
    # serialize all work onto one v7x core because of an odd block count. Extra
    # (padded) blocks are clamped in the index_map and zeroed by the in-kernel mask.
    num_slices = NUM_CORES if total_blocks >= NUM_CORES else 1
    blocks_per_slice = pl.cdiv(total_blocks, num_slices)
    padded_blocks = num_slices * blocks_per_slice

    last_block_full = (rows % block_rows) == 0
    first_masked_block = total_blocks if last_block_full else total_blocks - 1

    # int32 row-id safety (review note): fine for anything below ~2.7e11 elements.
    assert padded_blocks * block_rows < 2 ** 31, "int32 row-id overflow"

    if padded_blocks == total_blocks:
        def in_map(c, i):
            return (c * blocks_per_slice + i, 0)
    else:
        last = total_blocks - 1

        def in_map(c, i):
            # Clamp padded blocks onto the last real block; their contribution is
            # zeroed in-kernel via the logical row-id mask.
            return (jnp.minimum(c * blocks_per_slice + i, last), 0)

    kernel = _make_mse_kernel(rows, block_rows, acc_rows, blocks_per_slice,
                              first_masked_block, padded_blocks)

    # VMEM budget: 2 inputs x 2 pipeline buffers + headroom for f32 temporaries.
    in_block_bytes = block_rows * LANES * itemsize
    f32_block_bytes = block_rows * LANES * 4
    vmem_limit = int(min(max(2 * 2 * in_block_bytes + 3 * f32_block_bytes + (4 << 20),
                             32 << 20),
                         48 << 20))

    cost = pl.CostEstimate(
        flops=3 * aligned,            # sub, mul, add per element
        transcendentals=0,
        bytes_accessed=2 * aligned * itemsize + num_slices * 8 * LANES * 4,
    )

    partial = pl.pallas_call(
        kernel,
        out_shape=jax.ShapeDtypeStruct((num_slices * 8, LANES), jnp.float32),
        grid_spec=pltpu.PrefetchScalarGridSpec(
            num_scalar_prefetch=0,
            grid=(num_slices, blocks_per_slice),
            in_specs=[
                pl.BlockSpec((block_rows, LANES), in_map),
                pl.BlockSpec((block_rows, LANES), in_map),
            ],
            out_specs=pl.BlockSpec((8, LANES), lambda c, i: (c, 0)),
            scratch_shapes=[pltpu.VMEM((acc_rows, LANES), jnp.float32)],
        ),
        compiler_params=pltpu.CompilerParams(
            dimension_semantics=("parallel", "arbitrary"),
            vmem_limit_bytes=vmem_limit,
        ),
        cost_estimate=cost,
    )(p2, t2)

    # Tiny final reduce (<= 2*8*128 values) + mean; fused into the same jit dispatch.
    return (jnp.sum(partial) + tail_sum) / jnp.float32(n_elems)


if __name__ == "__main__":
    key = jax.random.PRNGKey(0)
    kp, kt = jax.random.split(key)

    # Small NCHW-style shape consistent with a time-series / conv-style input.
    shape = (2, 4, 16, 16)
    preds = jax.random.normal(kp, shape, dtype=jnp.float32)
    target = jax.random.normal(kt, shape, dtype=jnp.float32)

    loss = jax.block_until_ready(tsbert_loss(preds, target))
    ref = jnp.mean((preds - target) ** 2)
    assert jnp.allclose(loss, ref, rtol=1e-5, atol=1e-6), (loss, ref)

    # Second check: misaligned size exercises the masked-tail path + lane-tail path.
    shape2 = (3, 5, 7, 11)  # 1155 elements: not a multiple of 128
    p2 = jax.random.normal(kp, shape2, dtype=jnp.float32)
    t2 = jax.random.normal(kt, shape2, dtype=jnp.float32)
    loss2 = jax.block_until_ready(tsbert_loss(p2, t2))
    ref2 = jnp.mean((p2 - t2) ** 2)
    assert jnp.allclose(loss2, ref2, rtol=1e-5, atol=1e-6), (loss2, ref2)

    print("KERNEL_OK")
</pallas_src>

<mosaic_0001>
module attributes {stable_mosaic.version = 11 : i64} {
  func.func @mse_kernel(%arg0: i32, %arg1: i32, %arg2: memref<16x128xf32, #tpu.memory_space<vmem>>, %arg3: memref<16x128xf32, #tpu.memory_space<vmem>>, %arg4: memref<8x128xf32, #tpu.memory_space<vmem>>, %arg5: memref<16x128xf32, #tpu.memory_space<vmem>>) attributes {dimension_semantics = [#tpu.dimension_semantics<parallel>, #tpu.dimension_semantics<arbitrary>], iteration_bounds = array<i64: 1, 1>, scalar_prefetch = 0 : i64, scratch_operands = 1 : i64, tpu.core_type = #tpu.core_type<tc>, window_params = [{transform_indices = @transform_0, window_bounds = array<i64: 16, 128>}, {transform_indices = @transform_1, window_bounds = array<i64: 16, 128>}, {transform_indices = @transform_2, window_bounds = array<i64: 8, 128>}]} {
    %c0_i32 = arith.constant 0 : i32
    %0 = arith.cmpi eq, %arg1, %c0_i32 : i32
    %1 = arith.extui %0 : i1 to i32
    %c0_i32_0 = arith.constant 0 : i32
    %2 = arith.cmpi ne, %1, %c0_i32_0 : i32
    scf.if %2 {
      %cst_10 = arith.constant 0.000000e+00 : f32
      %15 = vector.broadcast %cst_10 : f32 to vector<16x128xf32>
      %c0_11 = arith.constant 0 : index
      %c0_12 = arith.constant 0 : index
      %16 = vector.load %arg5[%c0_11, %c0_12] : memref<16x128xf32, #tpu.memory_space<vmem>>, vector<16x128xf32>
      tpu.vector_store %arg5[%c0_11, %c0_12], %15 {strides = array<i32>} : memref<16x128xf32, #tpu.memory_space<vmem>>, vector<16x128xf32>,
    } else {
    }
    %c0 = arith.constant 0 : index
    %c0_1 = arith.constant 0 : index
    %3 = vector.load %arg2[%c0, %c0_1] : memref<16x128xf32, #tpu.memory_space<vmem>>, vector<16x128xf32>
    %c0_2 = arith.constant 0 : index
    %c0_3 = arith.constant 0 : index
    %4 = vector.load %arg3[%c0_2, %c0_3] : memref<16x128xf32, #tpu.memory_space<vmem>>, vector<16x128xf32>
    %5 = arith.subf %3, %4 : vector<16x128xf32>
    %c0_4 = arith.constant 0 : index
    %c0_5 = arith.constant 0 : index
    %6 = vector.load %arg5[%c0_4, %c0_5] : memref<16x128xf32, #tpu.memory_space<vmem>>, vector<16x128xf32>
    %7 = arith.mulf %5, %5 : vector<16x128xf32>
    %8 = vector.shape_cast %7 : vector<16x128xf32> to vector<1x16x128xf32>
    %cst = arith.constant dense<0.000000e+00> : vector<16x128xf32>
    %9 = vector.multi_reduction <add>, %8, %cst [0] : vector<1x16x128xf32> to vector<16x128xf32>
    %10 = arith.addf %6, %9 : vector<16x128xf32>
    %c0_6 = arith.constant 0 : index
    %c0_7 = arith.constant 0 : index
    %11 = vector.load %arg5[%c0_6, %c0_7] : memref<16x128xf32, #tpu.memory_space<vmem>>, vector<16x128xf32>
    tpu.vector_store %arg5[%c0_6, %c0_7], %10 {strides = array<i32>} : memref<16x128xf32, #tpu.memory_space<vmem>>, vector<16x128xf32>,
    %c0_i32_8 = arith.constant 0 : i32
    %12 = arith.cmpi eq, %arg1, %c0_i32_8 : i32
    %13 = arith.extui %12 : i1 to i32
    %c0_i32_9 = arith.constant 0 : i32
    %14 = arith.cmpi ne, %13, %c0_i32_9 : i32
    scf.if %14 {
      %c0_10 = arith.constant 0 : index
      %c0_11 = arith.constant 0 : index
      %15 = vector.load %arg5[%c0_10, %c0_11] : memref<16x128xf32, #tpu.memory_space<vmem>>, vector<16x128xf32>
      %16 = vector.shape_cast %15 : vector<16x128xf32> to vector<2x8x128xf32>
      %cst_12 = arith.constant dense<0.000000e+00> : vector<8x128xf32>
      %17 = vector.multi_reduction <add>, %16, %cst_12 [0] : vector<2x8x128xf32> to vector<8x128xf32>
      %c0_13 = arith.constant 0 : index
      %c0_14 = arith.constant 0 : index
      %18 = vector.load %arg4[%c0_13, %c0_14] : memref<8x128xf32, #tpu.memory_space<vmem>>, vector<8x128xf32>
      tpu.vector_store %arg4[%c0_13, %c0_14], %17 {strides = array<i32>} : memref<8x128xf32, #tpu.memory_space<vmem>>, vector<8x128xf32>,
    } else {
    }
    return
  }
  func.func @transform_0(%arg0: i32, %arg1: i32) -> (i32, i32) {
    %c1_i32 = arith.constant 1 : i32
    %0 = arith.muli %arg0, %c1_i32 : i32
    %1 = arith.addi %0, %arg1 : i32
    %c0_i32 = arith.constant 0 : i32
    %c0_i32_0 = arith.constant 0 : i32
    return %1, %c0_i32 : i32, i32
  }
  func.func @transform_1(%arg0: i32, %arg1: i32) -> (i32, i32) {
    %c1_i32 = arith.constant 1 : i32
    %0 = arith.muli %arg0, %c1_i32 : i32
    %1 = arith.addi %0, %arg1 : i32
    %c0_i32 = arith.constant 0 : i32
    %c0_i32_0 = arith.constant 0 : i32
    return %1, %c0_i32 : i32, i32
  }
  func.func @transform_2(%arg0: i32, %arg1: i32) -> (i32, i32) {
    %c0_i32 = arith.constant 0 : i32
    %c0_i32_0 = arith.constant 0 : i32
    return %arg0, %c0_i32 : i32, i32
  }
}

</mosaic_0001>

<bundles_post_ra>
// kernel: tsbert_loss.1
= control target key start
LH: loop header
LB: loop body
LE: loop exit
PB: predicated region body
PF: predicated region fallthrough
CT: control target
= control target key end

     0   :  { %s130_s0 = inlined_call_operand.vmem [shape: f32[16,128], index: 0, kind: input, shape index: {}]   ;;  %s131_s1 = inlined_call_operand.vmem [shape: f32[16,128], index: 1, kind: input, shape index: {}]   ;;  %s132_s2 = inlined_call_operand.vmem [shape: f32[8,128], index: 2, kind: output, shape index: {}]  }
   0x1   :  { %v61_v0 = vld [vmem:[%s130_s0] sm:$0xff]  ;;  %v62_v1 = vld [vmem:[%s130_s0 + $0x8] sm:$0xff] }
   0x2   :  { %v63_v2 = vld [vmem:[%s131_s1] sm:$0xff]  ;;  %v64_v3 = vld [vmem:[%s131_s1 + $0x8] sm:$0xff] }
   0x3   :  { %v65_v4 = vsub.f32 %v61_v0, %v63_v2  ;;  %v66_v5 = vsub.f32 %v62_v1, %v64_v3 }
   0x5   :  { %v69_v6 = vmul.f32 %v65_v4, %v65_v4  ;;  %v70_v7 = vmul.f32 %v66_v5, %v66_v5 }
   0x7   :  { %v82_v8 = vadd.f32 %v70_v7, %v69_v6 }
   0x9   :  { %83 = vst [vmem:[%s132_s2] sm:$0xff] %v82_v8 }

</bundles_post_ra>
